<compile_context>
chip_gen: v7x
topology: tpu7x:2x2x1
jax: 0.10.0
libtpu: 0.0.40
codegen_flags: <defaults>
</compile_context>

<pallas_src>
import functools

import jax
import jax.numpy as jnp
from jax.experimental import pallas as pl
from jax.experimental.pallas import tpu as pltpu


def _round_up(x, m):
    return (x + m - 1) // m * m


def fused_gcn2_kernel(a_ref, h0_ref, w1_ref, b1_ref, w2_ref, b2_ref,
                      out_ref, acc_ref, z_ref, h1_ref, *, tm, tk):
    """Grid = (layer l in {0,1}, dst-row tile i, src-row tile k).

    a_ref  : [tm, tk]  bf16  A_hat tile (dst rows i, src rows k)
    h0_ref : [tk, Dp]  bf16  layer-0 input features, src tile k (only used at l==0)
    w*_ref : [Dp, Dp]  bf16  linear weights (x @ W layout)
    b*_ref : [1, Dp]   f32   linear bias
    out_ref: [tm, Dp]  f32   layer-2 output tile
    acc_ref: [tm, Dp]  f32   aggregation accumulator (scratch)
    z_ref  : [Np, Dp]  bf16  Z = H@W+b for the current layer (scratch)
    h1_ref : [Np, Dp]  bf16  layer-1 output, resident in VMEM (fusion, scratch)
    """
    l = pl.program_id(0)            # layer index
    i = pl.program_id(1)            # dst-row tile
    k = pl.program_id(2)            # src-row tile (reduction axis)
    nk = pl.num_programs(2)

    row_k = pl.multiple_of(k * tk, 128)
    row_i = pl.multiple_of(i * tm, 128)

    # ---- Z[src tile k] = H_src @ W_l + b_l, computed once per (layer, src tile)
    #      on the first dst-tile pass only (bias added once, no redundant H@W).
    @pl.when(i == 0)
    def _():
        @pl.when(l == 0)
        def _():
            z = jnp.dot(h0_ref[...], w1_ref[...],
                        preferred_element_type=jnp.float32) + b1_ref[...]
            z_ref[pl.ds(row_k, tk), :] = z.astype(z_ref.dtype)

        @pl.when(l == 1)
        def _():
            h_prev = h1_ref[pl.ds(row_k, tk), :]
            z = jnp.dot(h_prev, w2_ref[...],
                        preferred_element_type=jnp.float32) + b2_ref[...]
            z_ref[pl.ds(row_k, tk), :] = z.astype(z_ref.dtype)

    # ---- neighborhood aggregation: acc += A_hat[i,k] @ Z[k]   (bf16 MXU, f32 acc)
    @pl.when(k == 0)
    def _():
        acc_ref[...] = jnp.zeros_like(acc_ref)

    acc_ref[...] += jnp.dot(a_ref[...], z_ref[pl.ds(row_k, tk), :],
                            preferred_element_type=jnp.float32)

    # ---- finalize this dst tile: relu, then stash (layer 1) or emit (layer 2).
    @pl.when(k == nk - 1)
    def _():
        h_out = jnp.maximum(acc_ref[...], 0.0)
        # TODO(synk): training-mode dropout would go here via pltpu.prng_random_bits.

        @pl.when(l == 0)
        def _():
            h1_ref[pl.ds(row_i, tm), :] = h_out.astype(h1_ref.dtype)

        @pl.when(l == 1)
        def _():
            out_ref[...] = h_out.astype(out_ref.dtype)


def fused_gcn2(a_hat, h0, w1, b1, w2, b2):
    n, d = h0.shape
    assert a_hat.shape == (n, n)

    d_p = _round_up(d, 128)                      # lane-dense feature dim
    n_p = _round_up(n, 128)
    tile = 256 if n_p % 256 == 0 else 128        # 256-wide tiles feed v6e/v7x MXU
    tm = tk = tile
    n_i = n_p // tm
    n_k = n_p // tk

    # Pad to tile-friendly shapes; cast matmul operands to bf16 (f32 accumulation
    # inside the kernel). Zero-padding is exact: padded src rows get z = b but
    # their A_hat columns are zero, so they contribute nothing.
    a_p = jnp.zeros((n_p, n_p), jnp.bfloat16).at[:n, :n].set(a_hat.astype(jnp.bfloat16))
    h_p = jnp.zeros((n_p, d_p), jnp.bfloat16).at[:n, :d].set(h0.astype(jnp.bfloat16))
    w1_p = jnp.zeros((d_p, d_p), jnp.bfloat16).at[:d, :d].set(w1.astype(jnp.bfloat16))
    w2_p = jnp.zeros((d_p, d_p), jnp.bfloat16).at[:d, :d].set(w2.astype(jnp.bfloat16))
    b1_p = jnp.zeros((1, d_p), jnp.float32).at[:, :d].set(b1.astype(jnp.float32))
    b2_p = jnp.zeros((1, d_p), jnp.float32).at[:, :d].set(b2.astype(jnp.float32))

    kernel = functools.partial(fused_gcn2_kernel, tm=tm, tk=tk)

    out = pl.pallas_call(
        kernel,
        out_shape=jax.ShapeDtypeStruct((n_p, d_p), jnp.float32),
        grid_spec=pltpu.PrefetchScalarGridSpec(
            num_scalar_prefetch=0,
            grid=(2, n_i, n_k),
            in_specs=[
                # A_hat tile — needed by both layers.
                pl.BlockSpec((tm, tk), lambda l, i, k: (i, k)),
                # layer-0 features, src tile k (pinned to block 0 during layer 1
                # so no useless DMA churn).
                pl.BlockSpec((tk, d_p), lambda l, i, k: (k * (1 - l), 0)),
                pl.BlockSpec((d_p, d_p), lambda l, i, k: (0, 0)),   # W1
                pl.BlockSpec((1, d_p), lambda l, i, k: (0, 0)),     # b1
                pl.BlockSpec((d_p, d_p), lambda l, i, k: (0, 0)),   # W2
                pl.BlockSpec((1, d_p), lambda l, i, k: (0, 0)),     # b2
            ],
            # during layer 0 the output block index stays at 0 (never written /
            # never flushed); layer 1 walks the dst tiles and writes each once.
            out_specs=pl.BlockSpec((tm, d_p), lambda l, i, k: (i * l, 0)),
            scratch_shapes=[
                pltpu.VMEM((tm, d_p), jnp.float32),    # acc (per dst tile)
                pltpu.VMEM((n_p, d_p), jnp.bfloat16),  # Z of current layer
                pltpu.VMEM((n_p, d_p), jnp.bfloat16),  # layer-1 output (fusion)
            ],
        ),
        compiler_params=pltpu.CompilerParams(
            dimension_semantics=("arbitrary", "arbitrary", "arbitrary"),
        ),
    )(a_p, h_p, w1_p, b1_p, w2_p, b2_p)

    return out[:n, :d]


@jax.jit
def model_forward(params, a_hat, in_feat):
    # Embedding lookup (glue — gather, not the hot path).
    h0 = params["emb"][in_feat]                     # [N, hidden_dim]
    return fused_gcn2(a_hat, h0, params["w1"], params["b1"],
                      params["w2"], params["b2"])


def reference_forward(params, a_hat, in_feat):
    # Same dtype policy as the kernel (bf16 MXU operands, f32 accumulation).
    h = params["emb"][in_feat]
    a_bf = a_hat.astype(jnp.bfloat16)
    for w, b in ((params["w1"], params["b1"]), (params["w2"], params["b2"])):
        z = jnp.dot(h.astype(jnp.bfloat16), w.astype(jnp.bfloat16),
                    preferred_element_type=jnp.float32) + b
        agg = jnp.dot(a_bf, z.astype(jnp.bfloat16),
                      preferred_element_type=jnp.float32)
        h = jnp.maximum(agg, 0.0)
    return h


if __name__ == "__main__":
    # small shapes: vocab(in_dim)=10, hidden_dim=32, N=16 nodes
    in_dim, hidden_dim, num_nodes = 10, 32, 16

    key = jax.random.PRNGKey(0)
    k_emb, k_w1, k_b1, k_w2, k_b2, k_feat, k_adj = jax.random.split(key, 7)

    params = {
        "emb": jax.random.normal(k_emb, (in_dim, hidden_dim), jnp.float32),
        "w1": jax.random.normal(k_w1, (hidden_dim, hidden_dim), jnp.float32)
        * (1.0 / jnp.sqrt(hidden_dim)),
        "b1": jax.random.normal(k_b1, (1, hidden_dim), jnp.float32) * 0.01,
        "w2": jax.random.normal(k_w2, (hidden_dim, hidden_dim), jnp.float32)
        * (1.0 / jnp.sqrt(hidden_dim)),
        "b2": jax.random.normal(k_b2, (1, hidden_dim), jnp.float32) * 0.01,
    }

    # integer node "token" ids -> Embedding input
    in_feat = jax.random.randint(k_feat, (num_nodes,), 0, in_dim)

    # synthetic graph: random adjacency + self-loops, A[dst, src]
    adj = (jax.random.uniform(k_adj, (num_nodes, num_nodes)) < 0.25).astype(
        jnp.float32
    )
    adj = jnp.maximum(adj, jnp.eye(num_nodes, dtype=jnp.float32))  # self-loops
    deg = adj.sum(axis=1)                        # in-degree per dst node
    norm = 1.0 / jnp.sqrt(deg)                   # DGL-style norm = deg^{-1/2}
    a_hat = norm[:, None] * adj * norm[None, :]  # diag(norm) A diag(norm)

    out = model_forward(params, a_hat, in_feat)
    jax.block_until_ready(out)

    ref = reference_forward(params, a_hat, in_feat)
    assert out.shape == (num_nodes, hidden_dim)
    assert jnp.allclose(out, ref, atol=1e-3, rtol=1e-3), (
        float(jnp.max(jnp.abs(out - ref))))

    print("KERNEL_OK")
</pallas_src>

<mosaic_0001>
module attributes {stable_mosaic.version = 11 : i64} {
  func.func @fused_gcn2_kernel(%arg0: i32, %arg1: i32, %arg2: i32, %arg3: memref<128x128xbf16, #tpu.memory_space<vmem>>, %arg4: memref<128x128xbf16, #tpu.memory_space<vmem>>, %arg5: memref<128x128xbf16, #tpu.memory_space<vmem>>, %arg6: memref<1x128xf32, #tpu.memory_space<vmem>>, %arg7: memref<128x128xbf16, #tpu.memory_space<vmem>>, %arg8: memref<1x128xf32, #tpu.memory_space<vmem>>, %arg9: memref<128x128xf32, #tpu.memory_space<vmem>>, %arg10: memref<128x128xf32, #tpu.memory_space<vmem>>, %arg11: memref<128x128xbf16, #tpu.memory_space<vmem>>, %arg12: memref<128x128xbf16, #tpu.memory_space<vmem>>) attributes {dimension_semantics = [#tpu.dimension_semantics<arbitrary>, #tpu.dimension_semantics<arbitrary>, #tpu.dimension_semantics<arbitrary>], iteration_bounds = array<i64: 2, 1, 1>, scalar_prefetch = 0 : i64, scratch_operands = 3 : i64, tpu.core_type = #tpu.core_type<tc>, window_params = [{transform_indices = @transform_0, window_bounds = array<i64: 128, 128>}, {transform_indices = @transform_1, window_bounds = array<i64: 128, 128>}, {pipeline_mode = #tpu.pipeline_mode<synchronous>, transform_indices = @transform_2, window_bounds = array<i64: 128, 128>}, {pipeline_mode = #tpu.pipeline_mode<synchronous>, transform_indices = @transform_3, window_bounds = array<i64: 1, 128>}, {pipeline_mode = #tpu.pipeline_mode<synchronous>, transform_indices = @transform_4, window_bounds = array<i64: 128, 128>}, {pipeline_mode = #tpu.pipeline_mode<synchronous>, transform_indices = @transform_5, window_bounds = array<i64: 1, 128>}, {transform_indices = @transform_6, window_bounds = array<i64: 128, 128>}]} {
    %c128_i32 = arith.constant 128 : i32
    %0 = arith.muli %arg2, %c128_i32 : i32
    %1 = tpu.assume_multiple %0, 128 : i32
    %c128_i32_0 = arith.constant 128 : i32
    %2 = arith.muli %arg1, %c128_i32_0 : i32
    %3 = tpu.assume_multiple %2, 128 : i32
    %c0_i32 = arith.constant 0 : i32
    %4 = arith.cmpi eq, %arg1, %c0_i32 : i32
    %5 = arith.extui %4 : i1 to i32
    %c0_i32_1 = arith.constant 0 : i32
    %6 = arith.cmpi ne, %5, %c0_i32_1 : i32
    scf.if %6 {
      %c0_i32_12 = arith.constant 0 : i32
      %20 = arith.cmpi eq, %arg0, %c0_i32_12 : i32
      %21 = arith.extui %20 : i1 to i32
      %c0_i32_13 = arith.constant 0 : i32
      %22 = arith.cmpi ne, %21, %c0_i32_13 : i32
      scf.if %22 {
        %c0_15 = arith.constant 0 : index
        %c0_16 = arith.constant 0 : index
        %26 = vector.load %arg4[%c0_15, %c0_16] : memref<128x128xbf16, #tpu.memory_space<vmem>>, vector<128x128xbf16>
        %c0_17 = arith.constant 0 : index
        %c0_18 = arith.constant 0 : index
        %27 = vector.load %arg5[%c0_17, %c0_18] : memref<128x128xbf16, #tpu.memory_space<vmem>>, vector<128x128xbf16>
        %cst_19 = arith.constant dense<0.000000e+00> : vector<128x128xf32>
        %28 = tpu.matmul %26, %27, %cst_19 {dimension_numbers = #tpu.dot_dimension_numbers<[1], [0], [0], [1], [0, 0, 1, 1], [], []>} : vector<128x128xbf16>, vector<128x128xbf16>, vector<128x128xf32> -> vector<128x128xf32>
        %c0_20 = arith.constant 0 : index
        %c0_21 = arith.constant 0 : index
        %29 = vector.load %arg6[%c0_20, %c0_21] : memref<1x128xf32, #tpu.memory_space<vmem>>, vector<1x128xf32>
        %30 = vector.broadcast %29 : vector<1x128xf32> to vector<128x128xf32>
        %31 = arith.addf %28, %30 : vector<128x128xf32>
        %32 = arith.truncf %31 : vector<128x128xf32> to vector<128x128xbf16>
        %33 = arith.index_cast %1 : i32 to index
        %c0_22 = arith.constant 0 : index
        %34 = vector.load %arg11[%33, %c0_22] : memref<128x128xbf16, #tpu.memory_space<vmem>>, vector<128x128xbf16>
        tpu.vector_store %arg11[%33, %c0_22], %32 {strides = array<i32>} : memref<128x128xbf16, #tpu.memory_space<vmem>>, vector<128x128xbf16>,
      } else {
      }
      %c1_i32 = arith.constant 1 : i32
      %23 = arith.cmpi eq, %arg0, %c1_i32 : i32
      %24 = arith.extui %23 : i1 to i32
      %c0_i32_14 = arith.constant 0 : i32
      %25 = arith.cmpi ne, %24, %c0_i32_14 : i32
      scf.if %25 {
        %26 = arith.index_cast %1 : i32 to index
        %c0_15 = arith.constant 0 : index
        %27 = vector.load %arg12[%26, %c0_15] : memref<128x128xbf16, #tpu.memory_space<vmem>>, vector<128x128xbf16>
        %c0_16 = arith.constant 0 : index
        %c0_17 = arith.constant 0 : index
        %28 = vector.load %arg7[%c0_16, %c0_17] : memref<128x128xbf16, #tpu.memory_space<vmem>>, vector<128x128xbf16>
        %cst_18 = arith.constant dense<0.000000e+00> : vector<128x128xf32>
        %29 = tpu.matmul %27, %28, %cst_18 {dimension_numbers = #tpu.dot_dimension_numbers<[1], [0], [0], [1], [0, 0, 1, 1], [], []>} : vector<128x128xbf16>, vector<128x128xbf16>, vector<128x128xf32> -> vector<128x128xf32>
        %c0_19 = arith.constant 0 : index
        %c0_20 = arith.constant 0 : index
        %30 = vector.load %arg8[%c0_19, %c0_20] : memref<1x128xf32, #tpu.memory_space<vmem>>, vector<1x128xf32>
        %31 = vector.broadcast %30 : vector<1x128xf32> to vector<128x128xf32>
        %32 = arith.addf %29, %31 : vector<128x128xf32>
        %33 = arith.truncf %32 : vector<128x128xf32> to vector<128x128xbf16>
        %34 = arith.index_cast %1 : i32 to index
        %c0_21 = arith.constant 0 : index
        %35 = vector.load %arg11[%34, %c0_21] : memref<128x128xbf16, #tpu.memory_space<vmem>>, vector<128x128xbf16>
        tpu.vector_store %arg11[%34, %c0_21], %33 {strides = array<i32>} : memref<128x128xbf16, #tpu.memory_space<vmem>>, vector<128x128xbf16>,
      } else {
      }
    } else {
    }
    %c0_i32_2 = arith.constant 0 : i32
    %7 = arith.cmpi eq, %arg2, %c0_i32_2 : i32
    %8 = arith.extui %7 : i1 to i32
    %c0_i32_3 = arith.constant 0 : i32
    %9 = arith.cmpi ne, %8, %c0_i32_3 : i32
    scf.if %9 {
      %cst_12 = arith.constant 0.000000e+00 : f32
      %20 = vector.broadcast %cst_12 : f32 to vector<128x128xf32>
      %c0_13 = arith.constant 0 : index
      %c0_14 = arith.constant 0 : index
      %21 = vector.load %arg10[%c0_13, %c0_14] : memref<128x128xf32, #tpu.memory_space<vmem>>, vector<128x128xf32>
      tpu.vector_store %arg10[%c0_13, %c0_14], %20 {strides = array<i32>} : memref<128x128xf32, #tpu.memory_space<vmem>>, vector<128x128xf32>,
    } else {
    }
    %c0 = arith.constant 0 : index
    %c0_4 = arith.constant 0 : index
    %10 = vector.load %arg10[%c0, %c0_4] : memref<128x128xf32, #tpu.memory_space<vmem>>, vector<128x128xf32>
    %c0_5 = arith.constant 0 : index
    %c0_6 = arith.constant 0 : index
    %11 = vector.load %arg3[%c0_5, %c0_6] : memref<128x128xbf16, #tpu.memory_space<vmem>>, vector<128x128xbf16>
    %12 = arith.index_cast %1 : i32 to index
    %c0_7 = arith.constant 0 : index
    %13 = vector.load %arg11[%12, %c0_7] : memref<128x128xbf16, #tpu.memory_space<vmem>>, vector<128x128xbf16>
    %cst = arith.constant dense<0.000000e+00> : vector<128x128xf32>
    %14 = tpu.matmul %11, %13, %cst {dimension_numbers = #tpu.dot_dimension_numbers<[1], [0], [0], [1], [0, 0, 1, 1], [], []>} : vector<128x128xbf16>, vector<128x128xbf16>, vector<128x128xf32> -> vector<128x128xf32>
    %15 = arith.addf %10, %14 : vector<128x128xf32>
    %c0_8 = arith.constant 0 : index
    %c0_9 = arith.constant 0 : index
    %16 = vector.load %arg10[%c0_8, %c0_9] : memref<128x128xf32, #tpu.memory_space<vmem>>, vector<128x128xf32>
    tpu.vector_store %arg10[%c0_8, %c0_9], %15 {strides = array<i32>} : memref<128x128xf32, #tpu.memory_space<vmem>>, vector<128x128xf32>,
    %c0_i32_10 = arith.constant 0 : i32
    %17 = arith.cmpi eq, %arg2, %c0_i32_10 : i32
    %18 = arith.extui %17 : i1 to i32
    %c0_i32_11 = arith.constant 0 : i32
    %19 = arith.cmpi ne, %18, %c0_i32_11 : i32
    scf.if %19 {
      %c0_12 = arith.constant 0 : index
      %c0_13 = arith.constant 0 : index
      %20 = vector.load %arg10[%c0_12, %c0_13] : memref<128x128xf32, #tpu.memory_space<vmem>>, vector<128x128xf32>
      %cst_14 = arith.constant 0.000000e+00 : f32
      %21 = vector.broadcast %cst_14 : f32 to vector<128x128xf32>
      %22 = arith.maximumf %20, %21 : vector<128x128xf32>
      %c0_i32_15 = arith.constant 0 : i32
      %23 = arith.cmpi eq, %arg0, %c0_i32_15 : i32
      %24 = arith.extui %23 : i1 to i32
      %c0_i32_16 = arith.constant 0 : i32
      %25 = arith.cmpi ne, %24, %c0_i32_16 : i32
      scf.if %25 {
        %29 = arith.truncf %22 : vector<128x128xf32> to vector<128x128xbf16>
        %30 = arith.index_cast %3 : i32 to index
        %c0_18 = arith.constant 0 : index
        %31 = vector.load %arg12[%30, %c0_18] : memref<128x128xbf16, #tpu.memory_space<vmem>>, vector<128x128xbf16>
        tpu.vector_store %arg12[%30, %c0_18], %29 {strides = array<i32>} : memref<128x128xbf16, #tpu.memory_space<vmem>>, vector<128x128xbf16>,
      } else {
      }
      %c1_i32 = arith.constant 1 : i32
      %26 = arith.cmpi eq, %arg0, %c1_i32 : i32
      %27 = arith.extui %26 : i1 to i32
      %c0_i32_17 = arith.constant 0 : i32
      %28 = arith.cmpi ne, %27, %c0_i32_17 : i32
      scf.if %28 {
        %c0_18 = arith.constant 0 : index
        %c0_19 = arith.constant 0 : index
        %29 = vector.load %arg9[%c0_18, %c0_19] : memref<128x128xf32, #tpu.memory_space<vmem>>, vector<128x128xf32>
        tpu.vector_store %arg9[%c0_18, %c0_19], %22 {strides = array<i32>} : memref<128x128xf32, #tpu.memory_space<vmem>>, vector<128x128xf32>,
      } else {
      }
    } else {
    }
    return
  }
  func.func @transform_0(%arg0: i32, %arg1: i32, %arg2: i32) -> (i32, i32) {
    %c0_i32 = arith.constant 0 : i32
    return %arg1, %arg2 : i32, i32
  }
  func.func @transform_1(%arg0: i32, %arg1: i32, %arg2: i32) -> (i32, i32) {
    %c1_i32 = arith.constant 1 : i32
    %0 = arith.subi %c1_i32, %arg0 : i32
    %1 = arith.muli %arg2, %0 : i32
    %c0_i32 = arith.constant 0 : i32
    %c0_i32_0 = arith.constant 0 : i32
    return %1, %c0_i32 : i32, i32
  }
  func.func @transform_2(%arg0: i32, %arg1: i32, %arg2: i32) -> (i32, i32) {
    %c0_i32 = arith.constant 0 : i32
    %c0_i32_0 = arith.constant 0 : i32
    %c0_i32_1 = arith.constant 0 : i32
    return %c0_i32, %c0_i32_0 : i32, i32
  }
  func.func @transform_3(%arg0: i32, %arg1: i32, %arg2: i32) -> (i32, i32) {
    %c0_i32 = arith.constant 0 : i32
    %c0_i32_0 = arith.constant 0 : i32
    %c0_i32_1 = arith.constant 0 : i32
    return %c0_i32, %c0_i32_0 : i32, i32
  }
  func.func @transform_4(%arg0: i32, %arg1: i32, %arg2: i32) -> (i32, i32) {
    %c0_i32 = arith.constant 0 : i32
    %c0_i32_0 = arith.constant 0 : i32
    %c0_i32_1 = arith.constant 0 : i32
    return %c0_i32, %c0_i32_0 : i32, i32
  }
  func.func @transform_5(%arg0: i32, %arg1: i32, %arg2: i32) -> (i32, i32) {
    %c0_i32 = arith.constant 0 : i32
    %c0_i32_0 = arith.constant 0 : i32
    %c0_i32_1 = arith.constant 0 : i32
    return %c0_i32, %c0_i32_0 : i32, i32
  }
  func.func @transform_6(%arg0: i32, %arg1: i32, %arg2: i32) -> (i32, i32) {
    %0 = arith.muli %arg1, %arg0 : i32
    %c0_i32 = arith.constant 0 : i32
    %c0_i32_0 = arith.constant 0 : i32
    return %0, %c0_i32 : i32, i32
  }
}

</mosaic_0001>

<bundles_post_ra>
// kernel: model_forward.1
= control target key start
LH: loop header
LB: loop body
LE: loop exit
PB: predicated region body
PF: predicated region fallthrough
CT: control target
= control target key end

     0   :  { %s1566_s21 = smov 0   ;;  %s1568_s22 = smov 0   ;;  %s1755_s0 = inlined_call_operand.vmem [shape: bf16[128,128], index: 0, kind: input, shape index: {}]   ;;  %s1756_s1 = inlined_call_operand.vmem [shape: bf16[128,128], index: 1, kind: input, shape index: {}]   ;;  %s1757_s2 = inlined_call_operand.vmem [shape: bf16[128,128], index: 2, kind: input, shape index: {}]   ;;  %s1758_s3 = inlined_call_operand.vmem [shape: f32[1,128], index: 3, kind: input, shape index: {}]   ;;  %s1759_s4 = inlined_call_operand.vmem [shape: bf16[128,128], index: 4, kind: input, shape index: {}]   ;;  %s1760_s5 = inlined_call_operand.vmem [shape: f32[1,128], index: 5, kind: input, shape index: {}]   ;;  %s1761_s6 = inlined_call_operand.vmem [shape: f32[128,128], index: 6, kind: output, shape index: {}]  }
   0x1   :  { %s1570_s23 = smov 0  }
   0x2 LB: > { %s35_s24 = sadd.s32 1, %s1525_s22  ;;  %p1216_p0 = scmp.ge.s32.totalorder %s1529_s23, 1  ;;  %s1529_s23 = sphi %s1570_s23, %s16_s23   ;;  %s1525_s22 = sphi %s1568_s22, %s1763_s22   ;;  %s1521_s21 = sphi %s1566_s21, %s1762_s21  }
   0x3   : > { %p37_p1 = scmp.ge.s32.totalorder %s35_s24, 2  ;;  %p258_p2 = scmp.lt.s32.totalorder %s1529_s23, 3 }
   0x5   : > { %s1765_s24 = smov (%p37_p1, %s35_s24), 0  ;;  %p259_p3 = pnand %p1216_p0, %p258_p2 }
   0x6   : > { %p1217_p4 = scmp.ne.s32.totalorder (!%p259_p3), %s1521_s21, 0 }
   0x7   : > { %262 = sbr.rel (%p259_p3) target bundleno = 806 (0x326), region = 44 }
   0xe   : > { %336 = sbr.rel (%p1217_p4) target bundleno = 275 (0x113), region = 52  ;;  %v1475_v0 = vld [vmem:[%s1757_s2] sm:$0xff] (!%p1217_p4)   ;;  %v1476_v1 = vld [vmem:[%s1757_s2 + $0x8] sm:$0xff] (!%p1217_p4)   ;;  %v1477_v2 = vld [vmem:[%s1757_s2 + $0x10] sm:$0xff] (!%p1217_p4)  }
   0xf   : > { %1307 = vmatprep.subr.bf16.mxu0 (!%p1217_p4), %v1475_v0  ;;  %1403 = vmatprep.subr.bf16.mxu1 (!%p1217_p4), %v1475_v0  ;;  %v1478_v3 = vld [vmem:[%s1757_s2 + $0x18] sm:$0xff] (!%p1217_p4)   ;;  %v1483_v4 = vld [vmem:[%s1756_s1] sm:$0xff] (!%p1217_p4)   ;;  %v1480_v7 = vld [vmem:[%s1757_s2 + $0x28] sm:$0xff] (!%p1217_p4)  }
  0x10   : > { %1308 = vmatpush3.bf16.msra.mxu0 (!%p1217_p4), %v1475_v0  ;;  %1411 = vmatpush3.bf16.msra.mxu1 (!%p1217_p4), %v1475_v0  ;;  %v1484_v5 = vld [vmem:[%s1756_s1 + $0x20] sm:$0xff] (!%p1217_p4)   ;;  %v1481_v8 = vld [vmem:[%s1757_s2 + $0x30] sm:$0xff] (!%p1217_p4)   ;;  %v1482_v9 = vld [vmem:[%s1757_s2 + $0x38] sm:$0xff] (!%p1217_p4)  }
  0x11   : > { %1309 = vmatprep.subr.bf16.mxu0 (!%p1217_p4), %v1476_v1  ;;  %1404 = vmatprep.subr.bf16.mxu1 (!%p1217_p4), %v1476_v1  ;;  %v1479_v6 = vld [vmem:[%s1757_s2 + $0x20] sm:$0xff] (!%p1217_p4)   ;;  %v1485_v10 = vld [vmem:[%s1756_s1 + $0x8] sm:$0xff] (!%p1217_p4)   ;;  %v1487_v12 = vld [vmem:[%s1756_s1 + $0x10] sm:$0xff] (!%p1217_p4)  }
  0x12   : > { %1323 = vmatprep.mubr.bf16.mxu0 (!%p1217_p4), %v1483_v4  ;;  %1331 = vmatprep.mubr.bf16.mxu1 (!%p1217_p4), %v1484_v5  ;;  %v1486_v11 = vld [vmem:[%s1756_s1 + $0x28] sm:$0xff] (!%p1217_p4)   ;;  %v1488_v13 = vld [vmem:[%s1756_s1 + $0x30] sm:$0xff] (!%p1217_p4)   ;;  %v1489_v14 = vld [vmem:[%s1756_s1 + $0x18] sm:$0xff] (!%p1217_p4)  }
  0x13   : > { %v1490_v15 = vld [vmem:[%s1756_s1 + $0x38] sm:$0xff] (!%p1217_p4)   ;;  %v1218_v17 = vld [vmem:[%s1758_s3] ss:$0 sm:$0xff] (!%p1217_p4) }
  0x14   : > { %1310 = vmatpush3.bf16.msra.mxu0 (!%p1217_p4), %v1476_v1  ;;  %1412 = vmatpush3.bf16.msra.mxu1 (!%p1217_p4), %v1476_v1 }
  0x15   : > { %1311 = vmatprep.subr.bf16.mxu0 %v1477_v2  ;;  %1405 = vmatprep.subr.bf16.mxu1 %v1477_v2 }
  0x18   : > { %1312 = vmatpush3.bf16.msra.mxu0 %v1477_v2  ;;  %1413 = vmatpush3.bf16.msra.mxu1 %v1477_v2 }
  0x19   : > { %1313 = vmatprep.subr.bf16.mxu0 %v1478_v3  ;;  %1406 = vmatprep.subr.bf16.mxu1 %v1478_v3 }
  0x1c   : > { %1314 = vmatpush3.bf16.msra.mxu0 %v1478_v3  ;;  %1414 = vmatpush3.bf16.msra.mxu1 %v1478_v3 }
  0x1d   : > { %1315 = vmatprep.subr.bf16.mxu0 %v1479_v6  ;;  %1407 = vmatprep.subr.bf16.mxu1 %v1479_v6 }
  0x20   : > { %1316 = vmatpush3.bf16.msra.mxu0 %v1479_v6  ;;  %1415 = vmatpush3.bf16.msra.mxu1 %v1479_v6 }
  0x21   : > { %1317 = vmatprep.subr.bf16.mxu0 %v1480_v7  ;;  %1408 = vmatprep.subr.bf16.mxu1 %v1480_v7 }
  0x24   : > { %1318 = vmatpush3.bf16.msra.mxu0 %v1480_v7  ;;  %1416 = vmatpush3.bf16.msra.mxu1 %v1480_v7 }
  0x25   : > { %1319 = vmatprep.subr.bf16.mxu0 %v1481_v8  ;;  %1409 = vmatprep.subr.bf16.mxu1 %v1481_v8 }
  0x28   : > { %1320 = vmatpush3.bf16.msra.mxu0 %v1481_v8  ;;  %1417 = vmatpush3.bf16.msra.mxu1 %v1481_v8 }
  0x29   : > { %1321 = vmatprep.subr.bf16.mxu0 %v1482_v9  ;;  %1410 = vmatprep.subr.bf16.mxu1 %v1482_v9 }
  0x2c   : > { %1322 = vmatpush3.bf16.msra.mxu0 %v1482_v9  ;;  %1418 = vmatpush3.bf16.msra.mxu1 %v1482_v9 }
  0x2f   : > { %1324 = vmatmul.mubr.bf16.vlgmr.msra.gmra.mrb[0].mxu0 %v1485_v10  ;;  %1332 = vmatmul.mubr.bf16.vlgmr.msra.gmra.mrb[0].mxu1 %v1486_v11 }
  0x30   : > { %1327 = vmatprep.mubr.bf16.mxu0 %v1487_v12  ;;  %1335 = vmatprep.mubr.bf16.mxu1 %v1488_v13 }
  0x37   : > { %1328 = vmatmul.mubr.bf16.gmra.mrb[4].mxu0 %v1489_v14  ;;  %1336 = vmatmul.mubr.bf16.gmra.mrb[4].mxu1 %v1490_v15 }
 0x102   : > { %v1325_v16 = vpop.f32.mrb[0].mxu0  ;;  %v1333_v18 = vpop.f32.mrb[0].mxu1 }
 0x103   : > { %v506_v19 = vpop.f32.mrb[1].mxu0  ;;  %v538_v20 = vpop.f32.mrb[1].mxu1  ;;  %v515_v23 = vadd.f32 %v1325_v16, %v1218_v17  ;;  %v547_v24 = vadd.f32 %v1333_v18, %v1218_v17 }
 0x104   : > { %v1326_v21 = vpop.f32.mrb[2].mxu0  ;;  %v1334_v22 = vpop.f32.mrb[2].mxu1  ;;  %v507_v29 = vadd.f32 %v1218_v17, %v506_v19  ;;  %v539_v30 = vadd.f32 %v1218_v17, %v538_v20 }
 0x105   : > { %v518_v25 = vadd.f32 %v1326_v21, %v1218_v17  ;;  %v550_v26 = vadd.f32 %v1334_v22, %v1218_v17  ;;  %v509_v27 = vpop.f32.mrb[3].mxu0  ;;  %v541_v28 = vpop.f32.mrb[3].mxu1 }
 0x106   : > { %v510_v31 = vadd.f32 %v1218_v17, %v509_v27  ;;  %v542_v32 = vadd.f32 %v1218_v17, %v541_v28 }
 0x107   : > { %v570_v33 = vpack.c.bf16 %v518_v25, %v515_v23  ;;  %v574_v34 = vpack.c.bf16 %v550_v26, %v547_v24 }
 0x108   : > { %v569_v35 = vpack.c.bf16 %v510_v31, %v507_v29  ;;  %v573_v36 = vpack.c.bf16 %v542_v32, %v539_v30 }
 0x109   : > { %582 = vst [vmem:[#allocation3 + $0x8] sm:$0xff] %v570_v33  ;;  %586 = vst [vmem:[#allocation3 + $0x28] sm:$0xff] %v574_v34 }
 0x10a   : > { %581 = vst [vmem:[#allocation3] sm:$0xff] %v569_v35  ;;  %585 = vst [vmem:[#allocation3 + $0x20] sm:$0xff] %v573_v36  ;;  %v1329_v37 = vpop.f32.mrb[4].mxu0  ;;  %v1337_v38 = vpop.f32.mrb[4].mxu1 }
 0x10b   : > { %v522_v39 = vpop.f32.mrb[5].mxu0  ;;  %v554_v40 = vpop.f32.mrb[5].mxu1  ;;  %v531_v43 = vadd.f32 %v1329_v37, %v1218_v17  ;;  %v563_v44 = vadd.f32 %v1337_v38, %v1218_v17 }
 0x10c   : > { %v1330_v41 = vpop.f32.mrb[6].mxu0  ;;  %v1338_v42 = vpop.f32.mrb[6].mxu1  ;;  %v523_v49 = vadd.f32 %v1218_v17, %v522_v39  ;;  %v555_v50 = vadd.f32 %v1218_v17, %v554_v40 }
 0x10d   : > { %v534_v45 = vadd.f32 %v1330_v41, %v1218_v17  ;;  %v566_v46 = vadd.f32 %v1338_v42, %v1218_v17  ;;  %v525_v47 = vpop.f32.mrb[7].mxu0  ;;  %v557_v48 = vpop.f32.mrb[7].mxu1 }
 0x10e   : > { %v526_v51 = vadd.f32 %v1218_v17, %v525_v47  ;;  %v558_v52 = vadd.f32 %v1218_v17, %v557_v48 }
 0x10f   : > { %v572_v53 = vpack.c.bf16 %v534_v45, %v531_v43  ;;  %v576_v54 = vpack.c.bf16 %v566_v46, %v563_v44 }
 0x110   : > { %v571_v55 = vpack.c.bf16 %v526_v51, %v523_v49  ;;  %v575_v56 = vpack.c.bf16 %v558_v52, %v555_v50 }
 0x111   : > { %584 = vst [vmem:[#allocation3 + $0x18] sm:$0xff] %v572_v53  ;;  %588 = vst [vmem:[#allocation3 + $0x38] sm:$0xff] %v576_v54 }
 0x112   : > { %583 = vst [vmem:[#allocation3 + $0x10] sm:$0xff] %v571_v55  ;;  %587 = vst [vmem:[#allocation3 + $0x30] sm:$0xff] %v575_v56 }
 0x113 PF: > { %p1235_p5 = scmp.ne.s32.totalorder %s1521_s21, 1 }
 0x114   : > { %v1491_v57 = vld [vmem:[%s1759_s4] sm:$0xff] (!%p1235_p5)   ;;  %v1492_v58 = vld [vmem:[%s1759_s4 + $0x8] sm:$0xff] (!%p1235_p5)   ;;  %v1493_v59 = vld [vmem:[%s1759_s4 + $0x10] sm:$0xff] (!%p1235_p5)  }
 0x115   : > { %592 = sbr.rel (%p1235_p5) target bundleno = 537 (0x219), region = 56  ;;  %1339 = vmatprep.subr.bf16.mxu0 (!%p1235_p5), %v1491_v57  ;;  %1419 = vmatprep.subr.bf16.mxu1 (!%p1235_p5), %v1491_v57  ;;  %v1494_v60 = vld [vmem:[%s1759_s4 + $0x18] sm:$0xff] (!%p1235_p5)   ;;  %v597_v61 = vld [vmem:[#allocation4] sm:$0xff] (!%p1235_p5)  ;;  %v1496_v0 = vld [vmem:[%s1759_s4 + $0x28] sm:$0xff] (!%p1235_p5)  }
 0x116   : > { %1340 = vmatpush3.bf16.msra.mxu0 (!%p1235_p5), %v1491_v57  ;;  %1427 = vmatpush3.bf16.msra.mxu1 (!%p1235_p5), %v1491_v57  ;;  %v601_v62 = vld [vmem:[#allocation4 + $0x20] sm:$0xff] (!%p1235_p5)  ;;  %v1497_v1 = vld [vmem:[%s1759_s4 + $0x30] sm:$0xff] (!%p1235_p5)   ;;  %v1498_v2 = vld [vmem:[%s1759_s4 + $0x38] sm:$0xff] (!%p1235_p5)  }
 0x117   : > { %1341 = vmatprep.subr.bf16.mxu0 (!%p1235_p5), %v1492_v58  ;;  %1420 = vmatprep.subr.bf16.mxu1 (!%p1235_p5), %v1492_v58  ;;  %v1495_v63 = vld [vmem:[%s1759_s4 + $0x20] sm:$0xff] (!%p1235_p5)   ;;  %v598_v3 = vld [vmem:[#allocation4 + $0x8] sm:$0xff] (!%p1235_p5)  ;;  %v599_v5 = vld [vmem:[#allocation4 + $0x10] sm:$0xff] (!%p1235_p5) }
 0x118   : > { %1355 = vmatprep.mubr.bf16.mxu0 (!%p1235_p5), %v597_v61  ;;  %1363 = vmatprep.mubr.bf16.mxu1 (!%p1235_p5), %v601_v62  ;;  %v602_v4 = vld [vmem:[#allocation4 + $0x28] sm:$0xff] (!%p1235_p5)  ;;  %v603_v6 = vld [vmem:[#allocation4 + $0x30] sm:$0xff] (!%p1235_p5)  ;;  %v600_v7 = vld [vmem:[#allocation4 + $0x18] sm:$0xff] (!%p1235_p5) }
 0x119   : > { %v604_v8 = vld [vmem:[#allocation4 + $0x38] sm:$0xff] (!%p1235_p5)  ;;  %v1236_v10 = vld [vmem:[%s1760_s5] ss:$0 sm:$0xff] (!%p1235_p5) }
 0x11a   : > { %1342 = vmatpush3.bf16.msra.mxu0 (!%p1235_p5), %v1492_v58  ;;  %1428 = vmatpush3.bf16.msra.mxu1 (!%p1235_p5), %v1492_v58 }
 0x11b   : > { %1343 = vmatprep.subr.bf16.mxu0 (!%p1235_p5), %v1493_v59  ;;  %1421 = vmatprep.subr.bf16.mxu1 (!%p1235_p5), %v1493_v59 }
 0x11e   : > { %1344 = vmatpush3.bf16.msra.mxu0 %v1493_v59  ;;  %1429 = vmatpush3.bf16.msra.mxu1 %v1493_v59 }
 0x11f   : > { %1345 = vmatprep.subr.bf16.mxu0 %v1494_v60  ;;  %1422 = vmatprep.subr.bf16.mxu1 %v1494_v60 }
 0x122   : > { %1346 = vmatpush3.bf16.msra.mxu0 %v1494_v60  ;;  %1430 = vmatpush3.bf16.msra.mxu1 %v1494_v60 }
 0x123   : > { %1347 = vmatprep.subr.bf16.mxu0 %v1495_v63  ;;  %1423 = vmatprep.subr.bf16.mxu1 %v1495_v63 }
 0x126   : > { %1348 = vmatpush3.bf16.msra.mxu0 %v1495_v63  ;;  %1431 = vmatpush3.bf16.msra.mxu1 %v1495_v63 }
 0x127   : > { %1349 = vmatprep.subr.bf16.mxu0 %v1496_v0  ;;  %1424 = vmatprep.subr.bf16.mxu1 %v1496_v0 }
 0x12a   : > { %1350 = vmatpush3.bf16.msra.mxu0 %v1496_v0  ;;  %1432 = vmatpush3.bf16.msra.mxu1 %v1496_v0 }
 0x12b   : > { %1351 = vmatprep.subr.bf16.mxu0 %v1497_v1  ;;  %1425 = vmatprep.subr.bf16.mxu1 %v1497_v1 }
 0x12e   : > { %1352 = vmatpush3.bf16.msra.mxu0 %v1497_v1  ;;  %1433 = vmatpush3.bf16.msra.mxu1 %v1497_v1 }
 0x12f   : > { %1353 = vmatprep.subr.bf16.mxu0 %v1498_v2  ;;  %1426 = vmatprep.subr.bf16.mxu1 %v1498_v2 }
 0x132   : > { %1354 = vmatpush3.bf16.msra.mxu0 %v1498_v2  ;;  %1434 = vmatpush3.bf16.msra.mxu1 %v1498_v2 }
 0x135   : > { %1356 = vmatmul.mubr.bf16.vlgmr.msra.gmra.mrb[0].mxu0 %v598_v3  ;;  %1364 = vmatmul.mubr.bf16.vlgmr.msra.gmra.mrb[0].mxu1 %v602_v4 }
 0x136   : > { %1359 = vmatprep.mubr.bf16.mxu0 %v599_v5  ;;  %1367 = vmatprep.mubr.bf16.mxu1 %v603_v6 }
 0x13d   : > { %1360 = vmatmul.mubr.bf16.gmra.mrb[4].mxu0 %v600_v7  ;;  %1368 = vmatmul.mubr.bf16.gmra.mrb[4].mxu1 %v604_v8 }
 0x208   : > { %v1357_v9 = vpop.f32.mrb[0].mxu0  ;;  %v1365_v11 = vpop.f32.mrb[0].mxu1 }
 0x209   : > { %v710_v12 = vpop.f32.mrb[1].mxu0  ;;  %v742_v13 = vpop.f32.mrb[1].mxu1  ;;  %v719_v16 = vadd.f32 %v1357_v9, %v1236_v10  ;;  %v751_v17 = vadd.f32 %v1365_v11, %v1236_v10 }
 0x20a   : > { %v1358_v14 = vpop.f32.mrb[2].mxu0  ;;  %v1366_v15 = vpop.f32.mrb[2].mxu1  ;;  %v711_v22 = vadd.f32 %v1236_v10, %v710_v12  ;;  %v743_v23 = vadd.f32 %v1236_v10, %v742_v13 }
 0x20b   : > { %v722_v18 = vadd.f32 %v1358_v14, %v1236_v10  ;;  %v754_v19 = vadd.f32 %v1366_v15, %v1236_v10  ;;  %v713_v20 = vpop.f32.mrb[3].mxu0  ;;  %v745_v21 = vpop.f32.mrb[3].mxu1 }
 0x20c   : > { %v714_v24 = vadd.f32 %v1236_v10, %v713_v20  ;;  %v746_v25 = vadd.f32 %v1236_v10, %v745_v21 }
 0x20d   : > { %v774_v26 = vpack.c.bf16 %v722_v18, %v719_v16  ;;  %v778_v27 = vpack.c.bf16 %v754_v19, %v751_v17 }
 0x20e   : > { %v773_v28 = vpack.c.bf16 %v714_v24, %v711_v22  ;;  %v777_v29 = vpack.c.bf16 %v746_v25, %v743_v23 }
 0x20f   : > { %784 = vst [vmem:[#allocation3 + $0x8] sm:$0xff] %v774_v26  ;;  %788 = vst [vmem:[#allocation3 + $0x28] sm:$0xff] %v778_v27 }
 0x210   : > { %783 = vst [vmem:[#allocation3] sm:$0xff] %v773_v28  ;;  %787 = vst [vmem:[#allocation3 + $0x20] sm:$0xff] %v777_v29  ;;  %v1361_v30 = vpop.f32.mrb[4].mxu0  ;;  %v1369_v31 = vpop.f32.mrb[4].mxu1 }
 0x211   : > { %v726_v32 = vpop.f32.mrb[5].mxu0  ;;  %v758_v33 = vpop.f32.mrb[5].mxu1  ;;  %v735_v36 = vadd.f32 %v1361_v30, %v1236_v10  ;;  %v767_v37 = vadd.f32 %v1369_v31, %v1236_v10 }
 0x212   : > { %v1362_v34 = vpop.f32.mrb[6].mxu0  ;;  %v1370_v35 = vpop.f32.mrb[6].mxu1  ;;  %v727_v42 = vadd.f32 %v1236_v10, %v726_v32  ;;  %v759_v43 = vadd.f32 %v1236_v10, %v758_v33 }
 0x213   : > { %v738_v38 = vadd.f32 %v1362_v34, %v1236_v10  ;;  %v770_v39 = vadd.f32 %v1370_v35, %v1236_v10  ;;  %v729_v40 = vpop.f32.mrb[7].mxu0  ;;  %v761_v41 = vpop.f32.mrb[7].mxu1 }
 0x214   : > { %v730_v44 = vadd.f32 %v1236_v10, %v729_v40  ;;  %v762_v45 = vadd.f32 %v1236_v10, %v761_v41 }
 0x215   : > { %v776_v46 = vpack.c.bf16 %v738_v38, %v735_v36  ;;  %v780_v47 = vpack.c.bf16 %v770_v39, %v767_v37 }
 0x216   : > { %v775_v48 = vpack.c.bf16 %v730_v44, %v727_v42  ;;  %v779_v49 = vpack.c.bf16 %v762_v45, %v759_v43 }
 0x217   : > { %786 = vst [vmem:[#allocation3 + $0x18] sm:$0xff] %v776_v46  ;;  %790 = vst [vmem:[#allocation3 + $0x38] sm:$0xff] %v780_v47 }
 0x218   : > { %785 = vst [vmem:[#allocation3 + $0x10] sm:$0xff] %v775_v48  ;;  %789 = vst [vmem:[#allocation3 + $0x30] sm:$0xff] %v779_v49 }
 0x219 PF: > { %v847_v50 = vld [vmem:[#allocation3] sm:$0xff]  ;;  %v848_v51 = vld [vmem:[#allocation3 + $0x8] sm:$0xff]  ;;  %v1503_v62 = vld [vmem:[%s1755_s0 + $0x10] sm:$0xff]  }
 0x21a   : > { %1371 = vmatprep.subr.bf16.mxu0 %v847_v50  ;;  %1435 = vmatprep.subr.bf16.mxu1 %v847_v50  ;;  %v1499_v53 = vld [vmem:[%s1755_s0] sm:$0xff]   ;;  %v852_v57 = vld [vmem:[#allocation3 + $0x28] sm:$0xff]  ;;  %v1504_v63 = vld [vmem:[%s1755_s0 + $0x30] sm:$0xff]  }
 0x21b   : > { %1372 = vmatpush3.bf16.msra.mxu0 %v847_v50  ;;  %1443 = vmatpush3.bf16.msra.mxu1 %v847_v50  ;;  %v1500_v54 = vld [vmem:[%s1755_s0 + $0x20] sm:$0xff]   ;;  %v1501_v60 = vld [vmem:[%s1755_s0 + $0x8] sm:$0xff]   ;;  %v1505_v0 = vld [vmem:[%s1755_s0 + $0x18] sm:$0xff]  }
 0x21c   : > { %1373 = vmatprep.subr.bf16.mxu0 %v848_v51  ;;  %1436 = vmatprep.subr.bf16.mxu1 %v848_v51  ;;  %v851_v56 = vld [vmem:[#allocation3 + $0x20] sm:$0xff]  ;;  %v1502_v61 = vld [vmem:[%s1755_s0 + $0x28] sm:$0xff]   ;;  %v1506_v1 = vld [vmem:[%s1755_s0 + $0x38] sm:$0xff]  }
 0x21d   : > { %1387 = vmatprep.mubr.bf16.mxu0 %v1499_v53  ;;  %1395 = vmatprep.mubr.bf16.mxu1 %v1500_v54 }
 0x21e   : > { %v850_v55 = vld [vmem:[#allocation3 + $0x18] sm:$0xff] }
 0x21f   : > { %v849_v52 = vld [vmem:[#allocation3 + $0x10] sm:$0xff]  ;;  %1374 = vmatpush3.bf16.msra.mxu0 %v848_v51  ;;  %1444 = vmatpush3.bf16.msra.mxu1 %v848_v51  ;;  %v854_v59 = vld [vmem:[#allocation3 + $0x38] sm:$0xff] }
 0x220   : > { %1375 = vmatprep.subr.bf16.mxu0 %v849_v52  ;;  %1437 = vmatprep.subr.bf16.mxu1 %v849_v52  ;;  %v853_v58 = vld [vmem:[#allocation3 + $0x30] sm:$0xff] }
 0x223   : > { %1376 = vmatpush3.bf16.msra.mxu0 %v849_v52  ;;  %1445 = vmatpush3.bf16.msra.mxu1 %v849_v52 }
 0x224   : > { %1377 = vmatprep.subr.bf16.mxu0 %v850_v55  ;;  %1438 = vmatprep.subr.bf16.mxu1 %v850_v55 }
 0x227   : > { %1378 = vmatpush3.bf16.msra.mxu0 %v850_v55  ;;  %1446 = vmatpush3.bf16.msra.mxu1 %v850_v55 }
 0x228   : > { %1379 = vmatprep.subr.bf16.mxu0 %v851_v56  ;;  %1439 = vmatprep.subr.bf16.mxu1 %v851_v56 }
 0x22b   : > { %1380 = vmatpush3.bf16.msra.mxu0 %v851_v56  ;;  %1447 = vmatpush3.bf16.msra.mxu1 %v851_v56 }
 0x22c   : > { %1381 = vmatprep.subr.bf16.mxu0 %v852_v57  ;;  %1440 = vmatprep.subr.bf16.mxu1 %v852_v57 }
 0x22f   : > { %1382 = vmatpush3.bf16.msra.mxu0 %v852_v57  ;;  %1448 = vmatpush3.bf16.msra.mxu1 %v852_v57 }
 0x230   : > { %1383 = vmatprep.subr.bf16.mxu0 %v853_v58  ;;  %1441 = vmatprep.subr.bf16.mxu1 %v853_v58 }
 0x233   : > { %1384 = vmatpush3.bf16.msra.mxu0 %v853_v58  ;;  %1449 = vmatpush3.bf16.msra.mxu1 %v853_v58 }
 0x234   : > { %1385 = vmatprep.subr.bf16.mxu0 %v854_v59  ;;  %1442 = vmatprep.subr.bf16.mxu1 %v854_v59 }
 0x237   : > { %1386 = vmatpush3.bf16.msra.mxu0 %v854_v59  ;;  %1450 = vmatpush3.bf16.msra.mxu1 %v854_v59 }
 0x23a   : > { %1388 = vmatmul.mubr.bf16.vlgmr.msra.gmra.mrb[0].mxu0 %v1501_v60  ;;  %1396 = vmatmul.mubr.bf16.vlgmr.msra.gmra.mrb[0].mxu1 %v1502_v61 }
 0x23b   : > { %1391 = vmatprep.mubr.bf16.mxu0 %v1503_v62  ;;  %1399 = vmatprep.mubr.bf16.mxu1 %v1504_v63 }
 0x242   : > { %1392 = vmatmul.mubr.bf16.gmra.mrb[4].mxu0 %v1505_v0  ;;  %1400 = vmatmul.mubr.bf16.gmra.mrb[4].mxu1 %v1506_v1 }
 0x30d   : > { %v1389_v2 = vpop.f32.mrb[0].mxu0  ;;  %v1397_v3 = vpop.f32.mrb[0].mxu1 }
 0x30e   : > { %v1053_v4 = vmax.f32 %v1389_v2, 0.0  ;;  %v1061_v5 = vmax.f32 %v1397_v3, 0.0  ;;  %v937_v6 = vpop.f32.mrb[1].mxu0  ;;  %v969_v7 = vpop.f32.mrb[1].mxu1 }
 0x30f   : > { %v1051_v8 = vmax.f32 %v937_v6, 0.0  ;;  %v1059_v9 = vmax.f32 %v969_v7, 0.0  ;;  %v1390_v10 = vpop.f32.mrb[2].mxu0  ;;  %v1398_v11 = vpop.f32.mrb[2].mxu1 }
 0x310   : > { %v1054_v12 = vmax.f32 %v1390_v10, 0.0  ;;  %v1062_v13 = vmax.f32 %v1398_v11, 0.0  ;;  %v940_v14 = vpop.f32.mrb[3].mxu0  ;;  %v972_v15 = vpop.f32.mrb[3].mxu1 }
 0x311   : > { %v1052_v16 = vmax.f32 %v940_v14, 0.0  ;;  %v1060_v17 = vmax.f32 %v972_v15, 0.0 }
 0x312   : > { %v1072_v35 = vpack.c.bf16 (!%p1217_p4), %v1054_v12, %v1053_v4  ;;  %v1076_v39 = vpack.c.bf16 (!%p1217_p4), %v1062_v13, %v1061_v5 }
 0x313   : > { %1070 = sbr.rel (%p1217_p4) target bundleno = 798 (0x31e), region = 68  ;;  %v1071_v34 = vpack.c.bf16 (!%p1217_p4), %v1052_v16, %v1051_v8  ;;  %v1075_v38 = vpack.c.bf16 (!%p1217_p4), %v1060_v17, %v1059_v9 }
 0x314   : > { %1084 = vst [vmem:[#allocation4 + $0x8] sm:$0xff] (!%p1217_p4), %v1072_v35  ;;  %1088 = vst [vmem:[#allocation4 + $0x28] sm:$0xff] (!%p1217_p4), %v1076_v39 }
 0x315   : > { %v1393_v18 = vpop.f32.mrb[4].mxu0  ;;  %v1401_v19 = vpop.f32.mrb[4].mxu1  ;;  %1083 = vst [vmem:[#allocation4] sm:$0xff] (!%p1217_p4), %v1071_v34  ;;  %1087 = vst [vmem:[#allocation4 + $0x20] sm:$0xff] (!%p1217_p4), %v1075_v38 }
 0x316   : > { %v1057_v20 = vmax.f32 %v1393_v18, 0.0  ;;  %v1065_v21 = vmax.f32 %v1401_v19, 0.0  ;;  %v953_v22 = vpop.f32.mrb[5].mxu0  ;;  %v985_v23 = vpop.f32.mrb[5].mxu1 }
 0x317   : > { %v1055_v24 = vmax.f32 %v953_v22, 0.0  ;;  %v1063_v25 = vmax.f32 %v985_v23, 0.0  ;;  %v1394_v26 = vpop.f32.mrb[6].mxu0  ;;  %v1402_v27 = vpop.f32.mrb[6].mxu1 }
 0x318   : > { %v1058_v28 = vmax.f32 %v1394_v26, 0.0  ;;  %v1066_v29 = vmax.f32 %v1402_v27, 0.0  ;;  %v956_v30 = vpop.f32.mrb[7].mxu0  ;;  %v988_v31 = vpop.f32.mrb[7].mxu1 }
 0x319   : > { %v1056_v32 = vmax.f32 %v956_v30, 0.0  ;;  %v1064_v33 = vmax.f32 %v988_v31, 0.0 }
 0x31a   : > { %v1074_v37 = vpack.c.bf16 %v1058_v28, %v1057_v20  ;;  %v1078_v41 = vpack.c.bf16 %v1066_v29, %v1065_v21 }
 0x31b   : > { %v1073_v36 = vpack.c.bf16 %v1056_v32, %v1055_v24  ;;  %v1077_v40 = vpack.c.bf16 %v1064_v33, %v1063_v25 }
 0x31c   : > { %1086 = vst [vmem:[#allocation4 + $0x18] sm:$0xff] %v1074_v37  ;;  %1090 = vst [vmem:[#allocation4 + $0x38] sm:$0xff] %v1078_v41 }
 0x31d   : > { %1085 = vst [vmem:[#allocation4 + $0x10] sm:$0xff] %v1073_v36  ;;  %1089 = vst [vmem:[#allocation4 + $0x30] sm:$0xff] %v1077_v40 }
 0x31e PF: > { %1094 = sbr.rel (%p1235_p5) target bundleno = 806 (0x326), region = 72  ;;  %1095 = vst [vmem:[%s1761_s6] sm:$0xff] (!%p1235_p5), %v1051_v8  ;;  %1096 = vst [vmem:[%s1761_s6 + $0x8] sm:$0xff] (!%p1235_p5), %v1052_v16 }
 0x31f   : > { %1097 = vst [vmem:[%s1761_s6 + $0x10] sm:$0xff] (!%p1235_p5), %v1053_v4  ;;  %1098 = vst [vmem:[%s1761_s6 + $0x18] sm:$0xff] (!%p1235_p5), %v1054_v12 }
 0x320   : > { %1099 = vst [vmem:[%s1761_s6 + $0x20] sm:$0xff] (!%p1235_p5), %v1055_v24  ;;  %1100 = vst [vmem:[%s1761_s6 + $0x28] sm:$0xff] (!%p1235_p5), %v1056_v32 }
 0x321   : > { %1101 = vst [vmem:[%s1761_s6 + $0x30] sm:$0xff] (!%p1235_p5), %v1057_v20  ;;  %1102 = vst [vmem:[%s1761_s6 + $0x38] sm:$0xff] (!%p1235_p5), %v1058_v28 }
 0x322   : > { %1103 = vst [vmem:[%s1761_s6 + $0x40] sm:$0xff] (!%p1235_p5), %v1059_v9  ;;  %1104 = vst [vmem:[%s1761_s6 + $0x48] sm:$0xff] (!%p1235_p5), %v1060_v17 }
 0x323   : > { %1105 = vst [vmem:[%s1761_s6 + $0x50] sm:$0xff] (!%p1235_p5), %v1061_v5  ;;  %1106 = vst [vmem:[%s1761_s6 + $0x58] sm:$0xff] (!%p1235_p5), %v1062_v13 }
 0x324   : > { %1107 = vst [vmem:[%s1761_s6 + $0x60] sm:$0xff] (!%p1235_p5), %v1063_v25  ;;  %1108 = vst [vmem:[%s1761_s6 + $0x68] sm:$0xff] (!%p1235_p5), %v1064_v33 }
 0x325   : > { %1109 = vst [vmem:[%s1761_s6 + $0x70] sm:$0xff] %v1065_v21  ;;  %1110 = vst [vmem:[%s1761_s6 + $0x78] sm:$0xff] %v1066_v29 }
 0x326 PF: > { %s16_s23 = sadd.s32 1, %s1529_s23   ;;  %s1762_s21 = smov %s1525_s22 }
 0x327   : > { %p13_p6 = scmp.ge.s32.totalorder %s16_s23, 4   ;;  %s1763_s22 = smov %s1765_s24 }
 0x329   :  { %15 = sbr.rel (!%p13_p6) target bundleno = 2 (0x2), region = 110 }

</bundles_post_ra>
